<compile_context>
chip_gen: v7x
topology: tpu7x:2x2x1
jax: 0.10.0
libtpu: 0.0.40
codegen_flags: <defaults>
</compile_context>

<pallas_src>
import functools

import jax
import jax.numpy as jnp
import numpy as np
from jax.experimental import pallas as pl
from jax.experimental.pallas import tpu as pltpu


def _round_up(v, m):
    return ((v + m - 1) // m) * m


def _ldam_acsl_kernel(nvalid_ref, x_ref, tgt_ref, m_ref, o_ref, *, s, logit_thre):
    i = pl.program_id(0)

    x = x_ref[...].astype(jnp.float32)        # (C, T) logits, classes on sublanes
    tgt = tgt_ref[...]                        # (1, T) int32 targets
    m = m_ref[...]                            # (C, 1) f32 per-class margins

    c, t = x.shape

    # Boolean one-hot of target (replaces torch scatter_); no f32 onehot.
    cls_ids = jax.lax.broadcasted_iota(jnp.int32, (c, t), 0)
    is_tgt = cls_ids == tgt                                            # (C, T) bool

    # batch_m = m_list[target] via select + sublane reduce (no gather).
    batch_m = jnp.sum(jnp.where(is_tgt, m, 0.0), axis=0, keepdims=True)  # (1, T)

    # output = where(index, x - batch_m, x)
    output = jnp.where(is_tgt, x - batch_m, x)                         # (C, T)

    # ---- LDAM: cross_entropy(s * output, target), summed (/n in wrapper) ----
    # TODO(synk): per-class `weight` for cross_entropy not implemented (weight=None only).
    z = s * output
    z_max = jnp.max(z, axis=0, keepdims=True)                          # (1, T)
    lse = z_max + jnp.log(jnp.sum(jnp.exp(z - z_max), axis=0, keepdims=True))
    z_tgt = s * jnp.sum(jnp.where(is_tgt, output, 0.0), axis=0, keepdims=True)
    ce_row = lse - z_tgt                                               # (1, T) per-sample CE

    # ---- ACSL: sigmoid(output) > thre  <=>  output > logit(thre) ----
    mask_b = (output > logit_thre) & jnp.logical_not(is_tgt)           # (C, T) bool
    # Masked entries are never the target, so the BCE term reduces to
    # -log(1 - sigmoid(output)) = softplus(output). Under the mask
    # output > logit_thre, so clamping at logit_thre keeps exp() bounded.
    oc = jnp.maximum(output, logit_thre)
    sp = oc + jnp.log1p(jnp.exp(-oc))
    # TODO(synk): on v6e/v7x the softplus exp/log1p could run in bf16 (2x EUP);
    # kept f32 so one kernel stays exact on v5e as well.
    mask_row = jnp.sum(mask_b.astype(jnp.float32), axis=0, keepdims=True)   # (1, T)
    mbce_row = jnp.sum(jnp.where(mask_b, sp, 0.0), axis=0, keepdims=True)   # (1, T)

    # Sample-validity (tail padding) applied only to per-sample partial rows.
    col_ids = jax.lax.broadcasted_iota(jnp.int32, (1, t), 1)
    valid = (i * t + col_ids) < nvalid_ref[0]                          # (1, T) bool
    ce_sum = jnp.sum(jnp.where(valid, ce_row, 0.0))
    mask_sum = jnp.sum(jnp.where(valid, mask_row, 0.0))
    mbce_sum = jnp.sum(jnp.where(valid, mbce_row, 0.0))

    # Lane-dense (8, 128) partials block: lanes 0..2 = [ce, mask, mbce].
    lane = jax.lax.broadcasted_iota(jnp.int32, (8, 128), 1)
    vals = jnp.where(lane == 0, ce_sum, 0.0)
    vals = jnp.where(lane == 1, mask_sum, vals)
    vals = jnp.where(lane == 2, mbce_sum, vals)
    o_ref[...] = vals


def _choose_tile_n(n, c, x_itemsize):
    """Batch tile (lane axis) from a bytes-per-step / VMEM budget."""
    try:
        vmem_cap = int(pltpu.get_tpu_info().vmem_capacity_bytes)
    except Exception:
        vmem_cap = 64 * 1024 * 1024            # conservative v7x per-TC floor
    # Scoped limit: ~3/4 of physical, capped (96 MiB on v5e/v6e, 48 MiB on v7x).
    vmem_limit = int(min((vmem_cap * 3) // 4, 96 * 1024 * 1024))

    # Live bytes per batch column: double-buffered x + target blocks plus
    # ~8 f32 (C, tile) temporaries (x_f32, output, z, exp, sp, masks, ...).
    per_col = c * (2 * x_itemsize + 8 * 4) + 2 * 4
    t = (vmem_limit // 2) // max(per_col, 1)   # keep half the limit as slack

    # 1-4 MiB of x per grid step amortizes the ~0.35 us per-step overhead.
    t = min(t, (4 * 1024 * 1024) // max(c * x_itemsize, 1))

    # Keep >= 4 grid steps when the batch allows it (megacore + pipelining).
    t = min(t, max(_round_up(-(-n // 4), 128), 128))

    t = max((t // 128) * 128, 128)             # lane-dense, bf16-pack friendly
    return int(t), vmem_limit


def ldam_acsl_loss(x, target, m_list, *, s=30.0, acsl_thre=0.5, lambda_=1.0):
    """x: (N, C) f32/bf16 logits; target: (N,) int; m_list: (C,) f32 margins."""
    n, c = x.shape
    assert 0.0 < acsl_thre < 1.0, "acsl_thre must be strictly inside (0, 1)"

    tile_n, vmem_limit = _choose_tile_n(n, c, x.dtype.itemsize)
    n_pad = _round_up(n, tile_n)
    num_tiles = n_pad // tile_n

    # Classes -> sublanes, batch -> lanes (full 128-lane utilization for small C).
    xT = x.T                                            # (C, N); bf16 passes through
    tgtT = target.reshape(1, n).astype(jnp.int32)       # (1, N)
    if n_pad != n:
        xT = jnp.pad(xT, ((0, 0), (0, n_pad - n)))
        tgtT = jnp.pad(tgtT, ((0, 0), (0, n_pad - n)))
    m2d = m_list.reshape(c, 1).astype(jnp.float32)      # (C, 1)
    nvalid = jnp.array([n], dtype=jnp.int32)            # SMEM scalar prefetch

    # sigmoid(o) > thre  <=>  o > log(thre / (1 - thre))
    logit_thre = float(np.log(acsl_thre) - np.log1p(-acsl_thre))

    kernel = functools.partial(_ldam_acsl_kernel, s=float(s), logit_thre=logit_thre)

    partials = pl.pallas_call(
        kernel,
        out_shape=jax.ShapeDtypeStruct((num_tiles * 8, 128), jnp.float32),
        grid_spec=pltpu.PrefetchScalarGridSpec(
            num_scalar_prefetch=1,
            grid=(num_tiles,),
            in_specs=[
                pl.BlockSpec((c, tile_n), lambda i, nv: (0, i)),   # xT
                pl.BlockSpec((1, tile_n), lambda i, nv: (0, i)),   # target
                pl.BlockSpec((c, 1), lambda i, nv: (0, 0)),        # m_list
            ],
            out_specs=pl.BlockSpec((8, 128), lambda i, nv: (i, 0)),
        ),
        compiler_params=pltpu.CompilerParams(
            dimension_semantics=("parallel",),
            vmem_limit_bytes=vmem_limit,
        ),
    )(nvalid, xT, tgtT, m2d)

    p = partials.reshape(num_tiles, 8, 128)
    ce_sum = jnp.sum(p[:, 0, 0])
    mask_sum = jnp.sum(p[:, 0, 1])
    mbce_sum = jnp.sum(p[:, 0, 2])

    ldam_loss = ce_sum / jnp.float32(n)
    acsl_loss = jnp.where(mask_sum > 0.0,
                          mbce_sum / jnp.maximum(mask_sum, 1.0), 0.0)
    return ldam_loss + jnp.float32(lambda_) * acsl_loss


def make_m_list(cls_num_list, max_m=0.5):
    m = 1.0 / np.sqrt(np.sqrt(np.asarray(cls_num_list, dtype=np.float64)))
    m = m * (max_m / np.max(m))
    return jnp.asarray(m, dtype=jnp.float32)


def _reference(x, target, m_list, s=30.0, acsl_thre=0.5, lambda_=1.0):
    # pure-JAX reference mirroring the PyTorch module (weight=None path)
    n, c = x.shape
    onehot = jax.nn.one_hot(target, c, dtype=jnp.float32)
    batch_m = (onehot * m_list[None, :]).sum(1, keepdims=True)
    output = x.astype(jnp.float32) - onehot * batch_m
    z = s * output
    ce = jax.nn.logsumexp(z, axis=1) - (onehot * z).sum(1)
    ldam = ce.mean()
    p = jax.nn.sigmoid(output)
    mask = (p > acsl_thre).astype(jnp.float32) * (1.0 - onehot)
    num = mask.sum()
    bce = -(onehot * jnp.log(p) + (1 - onehot) * jnp.log(1 - p))
    acsl = jnp.where(num > 0, (mask * bce).sum() / jnp.maximum(num, 1.0), 0.0)
    return ldam + lambda_ * acsl


if __name__ == "__main__":
    C = 16  # num_classes
    cls_num_list = [200, 150, 120, 100, 80, 60, 50, 40, 30, 25, 20, 15, 10, 8, 5, 2]
    m_list = make_m_list(cls_num_list, max_m=0.5)

    key = jax.random.PRNGKey(0)

    # Case 1: small batch (padded up to one 128-lane tile).
    N = 8
    kx, kt, key = jax.random.split(key, 3)
    x = jax.random.normal(kx, (N, C), dtype=jnp.float32) * 2.0
    target = jax.random.randint(kt, (N,), 0, C, dtype=jnp.int32)
    loss = jax.block_until_ready(ldam_acsl_loss(x, target, m_list))
    ref = _reference(x, target, m_list)
    assert jnp.allclose(loss, ref, rtol=1e-4, atol=1e-4), (loss, ref)

    # Case 2: odd batch size -> exercises padding + the SMEM n_valid mask.
    N2 = 13
    kx2, kt2 = jax.random.split(key)
    x2 = jax.random.normal(kx2, (N2, C), dtype=jnp.float32) * 2.0
    target2 = jax.random.randint(kt2, (N2,), 0, C, dtype=jnp.int32)
    loss2 = jax.block_until_ready(ldam_acsl_loss(x2, target2, m_list))
    ref2 = _reference(x2, target2, m_list)
    assert jnp.allclose(loss2, ref2, rtol=1e-4, atol=1e-4), (loss2, ref2)

    print("KERNEL_OK")
</pallas_src>

<mosaic_0001>
module attributes {stable_mosaic.version = 11 : i64} {
  func.func @_ldam_acsl_kernel(%arg0: i32, %arg1: memref<1xi32, #tpu.memory_space<smem>>, %arg2: memref<16x128xf32, #tpu.memory_space<vmem>>, %arg3: memref<1x128xi32, #tpu.memory_space<vmem>>, %arg4: memref<16x1xf32, #tpu.memory_space<vmem>>, %arg5: memref<8x128xf32, #tpu.memory_space<vmem>>) attributes {dimension_semantics = [#tpu.dimension_semantics<parallel>], iteration_bounds = array<i64: 1>, scalar_prefetch = 1 : i64, scratch_operands = 0 : i64, tpu.core_type = #tpu.core_type<tc>, window_params = [{transform_indices = @transform_0, window_bounds = array<i64: 16, 128>}, {transform_indices = @transform_1, window_bounds = array<i64: 1, 128>}, {pipeline_mode = #tpu.pipeline_mode<synchronous>, transform_indices = @transform_2, window_bounds = array<i64: 16, 1>}, {transform_indices = @transform_3, window_bounds = array<i64: 8, 128>}]} {
    %c0 = arith.constant 0 : index
    %c0_0 = arith.constant 0 : index
    %0 = vector.load %arg2[%c0, %c0_0] : memref<16x128xf32, #tpu.memory_space<vmem>>, vector<16x128xf32>
    %c0_1 = arith.constant 0 : index
    %c0_2 = arith.constant 0 : index
    %1 = vector.load %arg3[%c0_1, %c0_2] : memref<1x128xi32, #tpu.memory_space<vmem>>, vector<1x128xi32>
    %c0_3 = arith.constant 0 : index
    %c0_4 = arith.constant 0 : index
    %2 = vector.load %arg4[%c0_3, %c0_4] : memref<16x1xf32, #tpu.memory_space<vmem>>, vector<16x1xf32>
    %3 = tpu.iota {dimensions = array<i32: 0>} : vector<16x128xi32>
    %4 = vector.broadcast %1 : vector<1x128xi32> to vector<16x128xi32>
    %5 = arith.cmpi eq, %3, %4 : vector<16x128xi32>
    %cst = arith.constant 0.000000e+00 : f32
    %6 = vector.shape_cast %2 : vector<16x1xf32> to vector<16x1xf32>
    %7 = vector.broadcast %6 : vector<16x1xf32> to vector<16x128xf32>
    %8 = vector.broadcast %cst : f32 to vector<16x128xf32>
    %9 = arith.select %5, %7, %8 : vector<16x128xi1>, vector<16x128xf32>
    %cst_5 = arith.constant dense<0.000000e+00> : vector<128xf32>
    %10 = vector.multi_reduction <add>, %9, %cst_5 [0] : vector<16x128xf32> to vector<128xf32>
    %11 = vector.shape_cast %10 : vector<128xf32> to vector<1x128xf32>
    %12 = vector.broadcast %11 : vector<1x128xf32> to vector<16x128xf32>
    %13 = arith.subf %0, %12 : vector<16x128xf32>
    %14 = arith.select %5, %13, %0 : vector<16x128xi1>, vector<16x128xf32>
    %cst_6 = arith.constant 3.000000e+01 : f32
    %15 = vector.broadcast %cst_6 : f32 to vector<16x128xf32>
    %16 = arith.mulf %15, %14 : vector<16x128xf32>
    %cst_7 = arith.constant dense<0xFF800000> : vector<128xf32>
    %17 = vector.multi_reduction <maximumf>, %16, %cst_7 [0] : vector<16x128xf32> to vector<128xf32>
    %18 = vector.shape_cast %17 : vector<128xf32> to vector<1x128xf32>
    %19 = vector.broadcast %18 : vector<1x128xf32> to vector<16x128xf32>
    %20 = arith.subf %16, %19 : vector<16x128xf32>
    %21 = math.exp %20 : vector<16x128xf32>
    %cst_8 = arith.constant dense<0.000000e+00> : vector<128xf32>
    %22 = vector.multi_reduction <add>, %21, %cst_8 [0] : vector<16x128xf32> to vector<128xf32>
    %23 = vector.shape_cast %22 : vector<128xf32> to vector<1x128xf32>
    %24 = math.log %23 : vector<1x128xf32>
    %25 = arith.addf %18, %24 : vector<1x128xf32>
    %cst_9 = arith.constant 0.000000e+00 : f32
    %26 = vector.broadcast %cst_9 : f32 to vector<16x128xf32>
    %27 = arith.select %5, %14, %26 : vector<16x128xi1>, vector<16x128xf32>
    %cst_10 = arith.constant dense<0.000000e+00> : vector<128xf32>
    %28 = vector.multi_reduction <add>, %27, %cst_10 [0] : vector<16x128xf32> to vector<128xf32>
    %29 = vector.shape_cast %28 : vector<128xf32> to vector<1x128xf32>
    %cst_11 = arith.constant 3.000000e+01 : f32
    %30 = vector.broadcast %cst_11 : f32 to vector<1x128xf32>
    %31 = arith.mulf %30, %29 : vector<1x128xf32>
    %32 = arith.subf %25, %31 : vector<1x128xf32>
    %cst_12 = arith.constant 0.000000e+00 : f32
    %33 = vector.broadcast %cst_12 : f32 to vector<16x128xf32>
    %34 = arith.cmpf ogt, %14, %33 : vector<16x128xf32>
    %cst_13 = arith.constant dense<true> : vector<16x128xi1>
    %35 = arith.xori %5, %cst_13 : vector<16x128xi1>
    %36 = arith.andi %34, %35 : vector<16x128xi1>
    %cst_14 = arith.constant 0.000000e+00 : f32
    %37 = vector.broadcast %cst_14 : f32 to vector<16x128xf32>
    %38 = arith.maximumf %14, %37 : vector<16x128xf32>
    %cst_15 = arith.constant 0.000000e+00 : f32
    %39 = vector.broadcast %cst_15 : f32 to vector<16x128xf32>
    %40 = arith.subf %39, %38 : vector<16x128xf32>
    %41 = math.exp %40 : vector<16x128xf32>
    %42 = math.log1p %41 : vector<16x128xf32>
    %43 = arith.addf %38, %42 : vector<16x128xf32>
    %44 = arith.extui %36 : vector<16x128xi1> to vector<16x128xi32>
    %45 = arith.sitofp %44 : vector<16x128xi32> to vector<16x128xf32>
    %cst_16 = arith.constant dense<0.000000e+00> : vector<128xf32>
    %46 = vector.multi_reduction <add>, %45, %cst_16 [0] : vector<16x128xf32> to vector<128xf32>
    %47 = vector.shape_cast %46 : vector<128xf32> to vector<1x128xf32>
    %cst_17 = arith.constant 0.000000e+00 : f32
    %48 = vector.broadcast %cst_17 : f32 to vector<16x128xf32>
    %49 = arith.select %36, %43, %48 : vector<16x128xi1>, vector<16x128xf32>
    %cst_18 = arith.constant dense<0.000000e+00> : vector<128xf32>
    %50 = vector.multi_reduction <add>, %49, %cst_18 [0] : vector<16x128xf32> to vector<128xf32>
    %51 = vector.shape_cast %50 : vector<128xf32> to vector<1x128xf32>
    %52 = tpu.iota {dimensions = array<i32: 1>} : vector<1x128xi32>
    %c128_i32 = arith.constant 128 : i32
    %53 = arith.muli %arg0, %c128_i32 : i32
    %54 = vector.broadcast %53 : i32 to vector<1x128xi32>
    %55 = arith.addi %54, %52 : vector<1x128xi32>
    %c0_19 = arith.constant 0 : index
    %56 = memref.load %arg1[%c0_19] : memref<1xi32, #tpu.memory_space<smem>>
    %57 = vector.broadcast %56 : i32 to vector<1x128xi32>
    %58 = arith.cmpi slt, %55, %57 : vector<1x128xi32>
    %cst_20 = arith.constant 0.000000e+00 : f32
    %59 = vector.broadcast %cst_20 : f32 to vector<1x128xf32>
    %60 = arith.select %58, %32, %59 : vector<1x128xi1>, vector<1x128xf32>
    %61 = vector.shape_cast %60 : vector<1x128xf32> to vector<1x1x128xf32>
    %cst_21 = arith.constant dense<0.000000e+00> : vector<1xf32>
    %62 = vector.multi_reduction <add>, %61, %cst_21 [1, 2] : vector<1x1x128xf32> to vector<1xf32>
    %63 = vector.shape_cast %62 : vector<1xf32> to vector<1x1x1xf32>
    %64 = vector.extract %63[0, 0, 0] : f32 from vector<1x1x1xf32>
    %cst_22 = arith.constant 0.000000e+00 : f32
    %65 = vector.broadcast %cst_22 : f32 to vector<1x128xf32>
    %66 = arith.select %58, %47, %65 : vector<1x128xi1>, vector<1x128xf32>
    %67 = vector.shape_cast %66 : vector<1x128xf32> to vector<1x1x128xf32>
    %cst_23 = arith.constant dense<0.000000e+00> : vector<1xf32>
    %68 = vector.multi_reduction <add>, %67, %cst_23 [1, 2] : vector<1x1x128xf32> to vector<1xf32>
    %69 = vector.shape_cast %68 : vector<1xf32> to vector<1x1x1xf32>
    %70 = vector.extract %69[0, 0, 0] : f32 from vector<1x1x1xf32>
    %cst_24 = arith.constant 0.000000e+00 : f32
    %71 = vector.broadcast %cst_24 : f32 to vector<1x128xf32>
    %72 = arith.select %58, %51, %71 : vector<1x128xi1>, vector<1x128xf32>
    %73 = vector.shape_cast %72 : vector<1x128xf32> to vector<1x1x128xf32>
    %cst_25 = arith.constant dense<0.000000e+00> : vector<1xf32>
    %74 = vector.multi_reduction <add>, %73, %cst_25 [1, 2] : vector<1x1x128xf32> to vector<1xf32>
    %75 = vector.shape_cast %74 : vector<1xf32> to vector<1x1x1xf32>
    %76 = vector.extract %75[0, 0, 0] : f32 from vector<1x1x1xf32>
    %77 = tpu.iota {dimensions = array<i32: 1>} : vector<8x128xi32>
    %c0_i32 = arith.constant 0 : i32
    %78 = vector.broadcast %c0_i32 : i32 to vector<8x128xi32>
    %79 = arith.cmpi eq, %77, %78 : vector<8x128xi32>
    %cst_26 = arith.constant 0.000000e+00 : f32
    %80 = vector.broadcast %64 : f32 to vector<8x128xf32>
    %81 = vector.broadcast %cst_26 : f32 to vector<8x128xf32>
    %82 = arith.select %79, %80, %81 : vector<8x128xi1>, vector<8x128xf32>
    %c1_i32 = arith.constant 1 : i32
    %83 = vector.broadcast %c1_i32 : i32 to vector<8x128xi32>
    %84 = arith.cmpi eq, %77, %83 : vector<8x128xi32>
    %85 = vector.broadcast %70 : f32 to vector<8x128xf32>
    %86 = arith.select %84, %85, %82 : vector<8x128xi1>, vector<8x128xf32>
    %c2_i32 = arith.constant 2 : i32
    %87 = vector.broadcast %c2_i32 : i32 to vector<8x128xi32>
    %88 = arith.cmpi eq, %77, %87 : vector<8x128xi32>
    %89 = vector.broadcast %76 : f32 to vector<8x128xf32>
    %90 = arith.select %88, %89, %86 : vector<8x128xi1>, vector<8x128xf32>
    %c0_27 = arith.constant 0 : index
    %c0_28 = arith.constant 0 : index
    %91 = vector.load %arg5[%c0_27, %c0_28] : memref<8x128xf32, #tpu.memory_space<vmem>>, vector<8x128xf32>
    tpu.vector_store %arg5[%c0_27, %c0_28], %90 {strides = array<i32>} : memref<8x128xf32, #tpu.memory_space<vmem>>, vector<8x128xf32>,
    return
  }
  func.func @transform_0(%arg0: i32, %arg1: memref<1xi32, #tpu.memory_space<smem>>) -> (i32, i32) {
    %c0_i32 = arith.constant 0 : i32
    %c0_i32_0 = arith.constant 0 : i32
    return %c0_i32, %arg0 : i32, i32
  }
  func.func @transform_1(%arg0: i32, %arg1: memref<1xi32, #tpu.memory_space<smem>>) -> (i32, i32) {
    %c0_i32 = arith.constant 0 : i32
    %c0_i32_0 = arith.constant 0 : i32
    return %c0_i32, %arg0 : i32, i32
  }
  func.func @transform_2(%arg0: i32, %arg1: memref<1xi32, #tpu.memory_space<smem>>) -> (i32, i32) {
    %c0_i32 = arith.constant 0 : i32
    %c0_i32_0 = arith.constant 0 : i32
    %c0_i32_1 = arith.constant 0 : i32
    return %c0_i32, %c0_i32_0 : i32, i32
  }
  func.func @transform_3(%arg0: i32, %arg1: memref<1xi32, #tpu.memory_space<smem>>) -> (i32, i32) {
    %c0_i32 = arith.constant 0 : i32
    %c0_i32_0 = arith.constant 0 : i32
    return %arg0, %c0_i32 : i32, i32
  }
}

</mosaic_0001>

<bundles_post_ra>
// kernel: tpu_custom_call.1
= control target key start
LH: loop header
LB: loop body
LE: loop exit
PB: predicated region body
PF: predicated region fallthrough
CT: control target
= control target key end

     0   :  { %v262_v1 = vmov 0   ;;  %s378_s0 = inlined_call_operand.<no memory space> [shape: s32[1], index: 0, kind: input, shape index: {}]   ;;  %s379_s1 = inlined_call_operand.vmem [shape: f32[16,128], index: 1, kind: input, shape index: {}]   ;;  %s380_s2 = inlined_call_operand.vmem [shape: s32[1,128], index: 2, kind: input, shape index: {}]   ;;  %s381_s3 = inlined_call_operand.vmem [shape: f32[16,1], index: 3, kind: input, shape index: {}]   ;;  %s382_s4 = inlined_call_operand.hbm [shape: f32[8,128], index: 4, kind: output, shape index: {}]  }
   0x1   :  { %v20_v0 = vld [vmem:[%s381_s3] sm:$0xff]  ;;  %223 = vset.pattern.permute.xlu0 %v262_v1 }
   0x2   :  { %10 = vsyncpa [#allocation5], 0  ;;  %33 = vperm.xlu0 %223, %v20_v0   ;;  %v21_v2 = vld [vmem:[%s381_s3 + $0x8] sm:$0xff]  ;;  %v22_v3 = vlaneseq  ;;  %v210_v6 = vld [vmem:[%s380_s2] ss:$0 sm:$0xff]  ;;  %vm263_vm3 = vmmov 1  }
   0x3   :  { %v17_v17 = vld [vmem:[%s379_s1] sm:$0xff]  ;;  %v18_v18 = vld [vmem:[%s379_s1 + $0x8] sm:$0xff]  ;;  %vm153_vm12 = vcmask 1040384   ;;  %s265_s24 = smov [#allocation4]  }
   0x4   :  { %v298_v4 = vshrl.u32 %v22_v3, 7  ;;  %s202_s25 = sshll.u32 %s265_s24, 4  ;;  %s203_s25 = int_to_ptr.vmem [resolvable:$true] %s202_s25 }
   0x5   :  { %s238_s28 = scalar_lea.vmem %s203_s25, 128  ;;  %p243_p1 = scmp.lt.s32.totalorder %s203_s25, %s203_s25 }
   0x6   :  { %38 = vperm.xlu0 %223, %v21_v2   ;;  %v301_v5 = vadd.s32 8, %v298_v4  ;;  %vm29_vm0 = vcmp.eq.s32.totalorder %v298_v4, %v210_v6  ;;  %p239_p0 = scmp.ne.s32.totalorder %s203_s25, %s238_s28  ;;  %p244_p2 = scmp.lt.s32.totalorder %s238_s28, %s238_s28 }
   0x7   :  { %vm92_vm5 = vmxor %vm29_vm0, %vm263_vm3 }
   0x8   :  { %vm30_vm1 = vcmp.eq.s32.totalorder %v301_v5, %v210_v6  ;;  %p245_p3 = por %p244_p2, %p243_p1 }
   0x9   :  { %vm93_vm4 = vmxor %vm30_vm1, %vm263_vm3 }
   0xa   :  { %p246_p4 = pnand %p245_p3, %p239_p0 }
  0x81   :  { %v34_v7 = vpop.permute.xlu0 %33 }
  0x82   :  { %v41_v9 = vsel %vm29_vm0, %v34_v7, 0.0 }
  0x85   :  { %v39_v8 = vpop.permute.xlu0 %38 }
  0x86   :  { %v42_v10 = vsel %vm30_vm1, %v39_v8, 0.0 }
  0x87   :  { %v43_v11 = vadd.f32 %v42_v10, %v41_v9  ;;  %v264_v9 = vmov 0.0  }
  0x89   :  { %v44_v12 = vrot.slane %v43_v11, 4 }
  0x8b   :  { %v45_v13 = vadd.f32 %v44_v12, %v43_v11 }
  0x8d   :  { %v46_v14 = vrot.slane %v45_v13, 2 }
  0x8f   :  { %v47_v15 = vadd.f32 %v46_v14, %v45_v13 }
  0x91   :  { %v48_v16 = vrot.slane %v47_v15, 1 }
  0x93   :  { %v49_v19 = vadd.f32 %v48_v16, %v47_v15 }
  0x95   :  { %v50_v20 = vsub.f32 %v17_v17, %v49_v19  ;;  %v51_v21 = vsub.f32 %v18_v18, %v49_v19 }
  0x97   :  { %v52_v22 = vsel %vm29_vm0, %v50_v20, %v17_v17  ;;  %v53_v23 = vsel %vm30_vm1, %v51_v21, %v18_v18  ;;  %v79_v54 = vsel %vm29_vm0, %v50_v20, 0.0  ;;  %v80_v55 = vsel %vm30_vm1, %v51_v21, 0.0 }
  0x98   :  { %v54_v24 = vmul.f32 30.0, %v52_v22  ;;  %v55_v25 = vmul.f32 30.0, %v53_v23  ;;  %v97_v26 = vmax.f32 %v53_v23, 0.0  ;;  %v96_v27 = vmax.f32 %v52_v22, 0.0 }
  0x99   :  { %vm91_vm2 = vcmp.gt.f32.partialorder %v53_v23, 0.0  ;;  %vm90_vm6 = vcmp.gt.f32.partialorder %v52_v22, 0.0  ;;  %v81_v0 = vadd.f32 %v80_v55, %v79_v54 }
  0x9a   :  { %v56_v28 = vmax.f32 %v54_v24, %v55_v25  ;;  %v99_v29 = vsub.f32 0.0, %v97_v26  ;;  %v98_v30 = vsub.f32 0.0, %v96_v27  ;;  %vm334_vm7 = vmand %vm91_vm2, %vm93_vm4 }
  0x9b   :  { %vm94_vm9 = vmand %vm90_vm6, %vm92_vm5  ;;  %v212_v11 = vsel %vm334_vm7, 1.0, %v264_v9  ;;  %v82_v13 = vrot.slane %v81_v0, 4 }
  0x9c   :  { %v57_v31 = vrot.slane %v56_v28, 4  ;;  %v102_v32 = vmul.f32 1.442695, %v99_v29  ;;  %v100_v33 = vmul.f32 1.442695, %v98_v30  ;;  %v211_v10 = vsel %vm94_vm9, 1.0, %v264_v9 }
  0x9d   :  { %v128_v16 = vadd.f32 %v212_v11, %v211_v10  ;;  %v83_v19 = vadd.f32 %v82_v13, %v81_v0 }
  0x9e   :  { %v58_v34 = vmax.f32 %v56_v28, %v57_v31  ;;  %224 = vpow2.f32 %v102_v32  ;;  %v343_v28 = vand.u32 127, %v22_v3  ;;  %v150_v31 = vstv %s378_s0 }
  0x9f   :  { %226 = vpow2.f32 %v100_v33  ;;  %v129_v22 = vrot.slane %v128_v16, 4 }
  0xa0   :  { %v59_v35 = vrot.slane %v58_v34, 2  ;;  %vm349_vm11 = vcmp.lt.s32.totalorder %v343_v28, %v150_v31  ;;  %vm186_vm13 = vcmp.eq.s32.totalorder %v343_v28, 0  ;;  %vm189_vm14 = vcmp.eq.s32.totalorder %v343_v28, 1 }
  0xa1   :  { %v130_v29 = vadd.f32 %v129_v22, %v128_v16  ;;  %vm192_vm15 = vcmp.eq.s32.totalorder %v343_v28, 2 }
  0xa2   :  { %v60_v36 = vmax.f32 %v58_v34, %v59_v35 }
  0xa3   :  { %v131_v35 = vrot.slane %v130_v29, 2 }
  0xa4   :  { %v61_v37 = vrot.slane %v60_v36, 1 }
  0xa6   :  { %v322_v38 = vmax.f32 %v60_v36, %v61_v37 }
  0xa8   :  { %v63_v39 = vsub.f32 %v54_v24, %v322_v38  ;;  %v64_v40 = vsub.f32 %v55_v25, %v322_v38  ;;  %v225_v41 = vpop.eup %224  ;;  %v84_v25 = vrot.slane %v83_v19, 2 }
  0xa9   :  { %v227_v42 = vpop.eup %226  ;;  %v113_v43 = vadd.f32 1.0, %v225_v41  ;;  %v116_v47 = vmul.f32 -0.5, %v225_v41  ;;  %v119_v51 = vand.u32 2147483647, %v225_v41 }
  0xaa   :  { %v65_v44 = vmul.f32 1.442695, %v63_v39  ;;  %v104_v45 = vadd.f32 1.0, %v227_v42  ;;  %v67_v46 = vmul.f32 1.442695, %v64_v40  ;;  %v107_v48 = vmul.f32 -0.5, %v227_v42 }
  0xab   :  { %228 = vlog2.f32 %v113_v43  ;;  %v117_v49 = vadd.f32 1.0, %v116_v47  ;;  %v110_v52 = vand.u32 2147483647, %v227_v42  ;;  %vm120_vm8 = vcmp.lt.f32.partialorder %v119_v51, 0.0004427343 }
  0xac   :  { %230 = vlog2.f32 %v104_v45  ;;  %v108_v50 = vadd.f32 1.0, %v107_v48  ;;  %v85_v32 = vadd.f32 %v84_v25, %v83_v19  ;;  %v132_v39 = vadd.f32 %v131_v35, %v130_v29 }
  0xad   :  { %232 = vpow2.f32 %v65_v44  ;;  %v118_v58 = vmul.f32 %v225_v41, %v117_v49  ;;  %vm111_vm10 = vcmp.lt.f32.partialorder %v110_v52, 0.0004427343 }
  0xae   :  { %234 = vpow2.f32 %v67_v46  ;;  %v109_v62 = vmul.f32 %v227_v42, %v108_v50  ;;  %v86_v37 = vrot.slane %v85_v32, 1  ;;  %v133_v43 = vrot.slane %v132_v39, 1 }
  0xb0   :  { %v87_v40 = vadd.f32 %v86_v37, %v85_v32  ;;  %v134_v47 = vadd.f32 %v133_v43, %v132_v39 }
  0xb2   :  { %v88_v45 = vmul.f32 30.0, %v87_v40  ;;  %v164_v50 = vsel %vm349_vm11, %v134_v47, 0.0 }
  0xb3   :  { %v165_v51 = vsel %vm153_vm12, %v164_v50, 0.0 }
  0xb5   :  { %v229_v53 = vpop.eup %228 }
  0xb6   :  { %v231_v56 = vpop.eup %230  ;;  %v115_v57 = vmul.f32 0.6931472, %v229_v53 }
  0xb7   :  { %v233_v59 = vpop.eup %232  ;;  %v106_v61 = vmul.f32 0.6931472, %v231_v56 }
  0xb8   :  { %v235_v63 = vpop.eup %234  ;;  %v121_v1 = vsel %vm120_vm8, %v118_v58, %v115_v57 }
  0xb9   :  { %v112_v2 = vsel %vm111_vm10, %v109_v62, %v106_v61  ;;  %v123_v4 = vadd.f32 %v121_v1, %v97_v26  ;;  %v69_v5 = vadd.f32 %v235_v63, %v233_v59 }
  0xba   :  { %v122_v6 = vadd.f32 %v112_v2, %v96_v27 }
  0xbb   :  { %v136_v7 = vsel %vm334_vm7, %v123_v4, 0.0  ;;  %v70_v8 = vrot.slane %v69_v5, 4 }
  0xbc   :  { %v135_v12 = vsel %vm94_vm9, %v122_v6, 0.0 }
  0xbd   :  { %v137_v14 = vadd.f32 %v136_v7, %v135_v12  ;;  %v71_v15 = vadd.f32 %v70_v8, %v69_v5 }
  0xbf   :  { %v138_v17 = vrot.slane %v137_v14, 4  ;;  %v72_v18 = vrot.slane %v71_v15, 2 }
  0xc1   :  { %v139_v20 = vadd.f32 %v138_v17, %v137_v14  ;;  %v73_v21 = vadd.f32 %v72_v18, %v71_v15 }
  0xc3   :  { %v140_v23 = vrot.slane %v139_v20, 2  ;;  %v74_v24 = vrot.slane %v73_v21, 1 }
  0xc5   :  { %v141_v26 = vadd.f32 %v140_v23, %v139_v20  ;;  %v75_v27 = vadd.f32 %v74_v24, %v73_v21 }
  0xc7   :  { %v142_v30 = vrot.slane %v141_v26, 1  ;;  %236 = vlog2.f32 %v75_v27 }
  0xc9   :  { %v143_v33 = vadd.f32 %v142_v30, %v141_v26 }
  0xcb   :  { %v175_v3 = vsel %vm349_vm11, %v143_v33, 0.0 }
  0xcc   :  { %v176_v36 = vsel %vm153_vm12, %v175_v3, 0.0 }
  0xcd   :  { %177 = vadd.xlane.f32.xlu0 %v176_v36 }
  0xd1   :  { %v237_v41 = vpop.eup %236 }
  0xd2   :  { %v77_v42 = vmul.f32 0.6931472, %v237_v41 }
  0xd4   :  { %v78_v44 = vadd.f32 %v77_v42, %v322_v38 }
  0xd6   :  { %v89_v46 = vsub.f32 %v78_v44, %v88_v45 }
  0xd8   :  { %v152_v48 = vsel %vm349_vm11, %v89_v46, 0.0 }
  0xd9   :  { %v154_v49 = vsel %vm153_vm12, %v152_v48, 0.0 }
  0xda   :  { %155 = vadd.xlane.f32.xlu1 %v154_v49 }
  0xde   :  { %166 = vadd.xlane.f32.xlu1 %v165_v51 }
 0x15a   :  { %v178_v52 = vpop.xlane.xlu0 %177 }
 0x15b   :  { %v179_v53 = vrot.slane %v178_v52, 4 }
 0x15d   :  { %v180_v54 = vadd.f32 %v179_v53, %v178_v52 }
 0x15f   :  { %v181_v57 = vrot.slane %v180_v54, 2 }
 0x161   :  { %v182_v63 = vadd.f32 %v181_v57, %v180_v54 }
 0x163   :  { %v183_v5 = vrot.slane %v182_v63, 1 }
 0x165   :  { %v184_v8 = vadd.f32 %v183_v5, %v182_v63 }
 0x167   :  { %v156_v55 = vpop.xlane.xlu1 %155 }
 0x168   :  { %v157_v38 = vrot.slane %v156_v55, 4 }
 0x16a   :  { %v158_v56 = vadd.f32 %v157_v38, %v156_v55 }
 0x16b   :  { %v167_v58 = vpop.xlane.xlu1 %166 }
 0x16c   :  { %v159_v59 = vrot.slane %v158_v56, 2  ;;  %v168_v60 = vrot.slane %v167_v58, 4 }
 0x16e   :  { %v169_v61 = vadd.f32 %v168_v60, %v167_v58  ;;  %v160_v62 = vadd.f32 %v159_v59, %v158_v56 }
 0x170   :  { %v170_v0 = vrot.slane %v169_v61, 2  ;;  %v161_v1 = vrot.slane %v160_v62, 1 }
 0x172   :  { %v171_v2 = vadd.f32 %v170_v0, %v169_v61  ;;  %v162_v4 = vadd.f32 %v161_v1, %v160_v62 }
 0x174   :  { %213 = vpush %v162_v4  ;;  %v172_v6 = vrot.slane %v171_v2, 1 }
 0x176   :  { %v173_v7 = vadd.f32 %v172_v6, %v171_v2 }
 0x178   :  { %215 = vpush %v173_v7 }
 0x179   :  { %217 = vpush %v184_v8 }
 0x1a5   :  { %s214_s0 = spop %213 }
 0x1a6   :  { %v187_v9 = vstv %s214_s0 }
 0x1a7   :  { %v188_v10 = vsel %vm186_vm13, %v187_v9, 0.0 }
 0x1a9   :  { %s216_s26 = spop %215 }
 0x1aa   :  { %v190_v11 = vstv %s216_s26  ;;  %s218_s27 = spop %217 }
 0x1ab   :  { %v191_v12 = vsel %vm189_vm14, %v190_v11, %v188_v10  ;;  %v193_v13 = vstv %s218_s27 }
 0x1ac   :  { %v194_v14 = vsel %vm192_vm15, %v193_v13, %v191_v12 }
 0x1ad   :  { %195 = vst [vmem:[#allocation4] sm:$0xff] %v194_v14 }
 0x1ae   :  { %249 = shalt.err (!%p246_p4)
}
 0x1af   :  { %s250_s5 = scalar_lea.hbm %s382_s4, 128 }
 0x1b0   :  { %p251_p5 = scmp.ne.s32.totalorder %s382_s4, %s250_s5  ;;  %p254_p6 = scmp.lt.u32.totalorder %s250_s5, %s382_s4 }
 0x1b2   :  { %p256_p7 = pnand %p254_p6, %p251_p5 }
 0x1b4   :  { %259 = shalt.err (!%p256_p7)
}
 0x1b5   :  { %205 = dma.vmem_to_hbm [thread:$0]  %s203_s25, 128, %s382_s4, [#allocation5]  }
 0x1b6   :  { %260 = dma.done.wait [#allocation5], 128  }
 0x1b7   :  { %261 = vsyncadd [#allocation5], 4294967168 }
 0x1b8   :  { %209 = vsyncpa [#allocation5], 1 }

</bundles_post_ra>
